<compile_context>
chip_gen: v7x
topology: tpu7x:2x2x1
jax: 0.10.0
libtpu: 0.0.40
codegen_flags: <defaults>
</compile_context>

<pallas_src>
import functools

import jax
import jax.numpy as jnp
from jax.experimental import pallas as pl
from jax.experimental.pallas import tpu as pltpu


def _make_yolo_loss_kernel(B, num_classes, lambda_coord, lambda_noobj):
    # Plain Python floats become jaxpr literals -> no captured jnp constants.
    lc = float(lambda_coord)
    ln = float(lambda_noobj)

    def kernel(pred_ref, tgt_ref, out_ref, acc_ref):
        # pred_ref: (B*5 + C, rows, 128)   tgt_ref: (5 + C, rows, 128)
        rows = pred_ref.shape[1]

        def prow(i):
            return pred_ref[i].astype(jnp.float32)      # dense (rows, 128)

        def trow(i):
            return tgt_ref[i].astype(jnp.float32)

        m_pid = pl.program_id(1)

        @pl.when(m_pid == 0)
        def _init():
            acc_ref[...] = jnp.zeros_like(acc_ref)

        tx, ty, tw, th, tc = trow(0), trow(1), trow(2), trow(3), trow(4)
        obj = tc > 0.0                                   # (rows, 128) bool

        # target box corners (xyxy) + area directly from w,h
        tx1 = tx - tw * 0.5
        ty1 = ty - th * 0.5
        tx2 = tx + tw * 0.5
        ty2 = ty + th * 0.5
        area_t = jnp.maximum(tw, 0.0) * jnp.maximum(th, 0.0)

        # ---- per-box intersection / union (no divides; only the comparison
        # of IoUs is needed, done cross-multiplied below)
        inters = []
        unions = []
        for b in range(B):
            o = 5 * b
            px, py, pw, ph = prow(o), prow(o + 1), prow(o + 2), prow(o + 3)
            px1 = px - pw * 0.5
            py1 = py - ph * 0.5
            px2 = px + pw * 0.5
            py2 = py + ph * 0.5
            iw = jnp.maximum(jnp.minimum(px2, tx2) - jnp.maximum(px1, tx1), 0.0)
            ih = jnp.maximum(jnp.minimum(py2, ty2) - jnp.maximum(py1, ty1), 0.0)
            inter = iw * ih
            area_p = jnp.maximum(pw, 0.0) * jnp.maximum(ph, 0.0)
            inters.append(inter)
            unions.append(area_p + area_t - inter + 1e-6)

        # ---- responsible box: first index wins ties (torch.max semantics)
        if B == 2:
            # iou0 >= iou1  <=>  inter0*union1 >= inter1*union0 (unions > 0)
            r0 = inters[0] * unions[1] >= inters[1] * unions[0]
            resp = [r0, jnp.logical_not(r0)]
        else:
            ious = [inters[b] / unions[b] for b in range(B)]
            max_iou = functools.reduce(jnp.maximum, ious)
            prev = jnp.zeros_like(obj)
            resp = []
            for b in range(B):
                is_best = (ious[b] >= max_iou) & (~prev)
                resp.append(is_best)
                prev = prev | is_best

        sqrt_tw = jnp.sqrt(tw + 1e-6)
        sqrt_th = jnp.sqrt(th + 1e-6)

        # ---- fused per-cell loss vector; responsible/no-obj blend via select
        cell = jnp.zeros_like(tx)
        for b in range(B):
            o = 5 * b
            px, py, pw, ph, pc = (prow(o), prow(o + 1), prow(o + 2),
                                  prow(o + 3), prow(o + 4))
            coord = (px - tx) ** 2 + (py - ty) ** 2
            dw = jnp.sqrt(jnp.maximum(pw, 1e-6)) - sqrt_tw
            dh = jnp.sqrt(jnp.maximum(ph, 1e-6)) - sqrt_th
            size = dw * dw + dh * dh
            conf_obj = (pc - tc) ** 2
            conf_noobj = pc * pc
            mask = obj & resp[b]
            cell = cell + jnp.where(mask,
                                    lc * (coord + size) + conf_obj,
                                    ln * conf_noobj)

        # class loss (per-cell sum of squares over classes)
        cls_sq = jnp.zeros_like(tx)
        for c in range(num_classes):
            d = prow(5 * B + c) - trow(5 + c)
            cls_sq = cls_sq + d * d
        cell = cell + jnp.where(obj, cls_sq, 0.0)

        # ---- per-tile accumulation into the (8,128) scratch with pure vreg
        # adds; the single cross-lane reduce happens once per partial.
        tile_acc = cell[0:8, :]
        for r0 in range(8, rows, 8):
            tile_acc = tile_acc + cell[r0:r0 + 8, :]
        acc_ref[...] = acc_ref[...] + tile_acc

        @pl.when(m_pid == pl.num_programs(1) - 1)
        def _finalize():
            out_ref[...] = jnp.broadcast_to(jnp.sum(acc_ref[...]),
                                            out_ref.shape)

    return kernel


def _default_num_partials():
    # 2 partials ("parallel" outer grid axis) only pays on v7x (2 TCs/chip).
    try:
        kind = jax.devices()[0].device_kind.lower()
    except Exception:
        return 1
    return 2 if ("v7" in kind or "7x" in kind) else 1


def yolo_loss_pallas(predictions, target, *, S=7, B=2, num_classes=6,
                     lambda_coord=5.0, lambda_noobj=0.5,
                     tile_m=16384, num_partials=None):
    N = predictions.shape[0]
    M = N * S * S
    f_pred = B * 5 + num_classes
    f_tgt = 5 + num_classes

    if num_partials is None:
        num_partials = _default_num_partials()
    # Avoid tile fragmentation / padded busywork when M is small.
    if num_partials > 1 and M < num_partials * 4096:
        num_partials = 1

    # Tile sizing: multiples of 1024 lanes so tm//128 is a multiple of 8
    # (dense (8,128) sublane tiling of every field slice).
    per_part = -(-M // num_partials)
    per_part_pad = ((per_part + 1023) // 1024) * 1024
    tm = max(1024, min((tile_m // 1024) * 1024, per_part_pad))
    tiles_per_part = -(-per_part_pad // tm)
    m_pad = num_partials * tiles_per_part * tm
    rows_total = m_pad // 128
    rows_tile = tm // 128

    # Feature-major, sublane-dense layout: pad along M *before* the transpose
    # (so XLA can fuse pad+transpose into one copy), then a free reshape to
    # (features, M/128, 128). Zero-padded cells are "no object, zero
    # confidence" and contribute exactly 0 to every loss term.
    pred2 = jnp.pad(predictions.reshape(M, f_pred).astype(jnp.float32),
                    ((0, m_pad - M), (0, 0)))
    tgt2 = jnp.pad(target.reshape(M, f_tgt).astype(jnp.float32),
                   ((0, m_pad - M), (0, 0)))
    pred_t = jnp.transpose(pred2).reshape(f_pred, rows_total, 128)
    tgt_t = jnp.transpose(tgt2).reshape(f_tgt, rows_total, 128)

    kernel = _make_yolo_loss_kernel(B, num_classes, lambda_coord, lambda_noobj)

    partials = pl.pallas_call(
        kernel,
        out_shape=jax.ShapeDtypeStruct((num_partials, 8, 128), jnp.float32),
        grid_spec=pltpu.PrefetchScalarGridSpec(
            num_scalar_prefetch=0,
            grid=(num_partials, tiles_per_part),
            in_specs=[
                pl.BlockSpec((f_pred, rows_tile, 128),
                             lambda p, m: (0, p * tiles_per_part + m, 0)),
                pl.BlockSpec((f_tgt, rows_tile, 128),
                             lambda p, m: (0, p * tiles_per_part + m, 0)),
            ],
            out_specs=pl.BlockSpec((1, 8, 128), lambda p, m: (p, 0, 0)),
            scratch_shapes=[pltpu.VMEM((8, 128), jnp.float32)],
        ),
        compiler_params=pltpu.CompilerParams(
            dimension_semantics=("parallel", "arbitrary")),
    )(pred_t, tgt_t)

    # Every element of a partial's (8,128) block holds that partial's scalar
    # sum; pick one per partial and finish the reduction host-side.
    return jnp.sum(partials[:, 0, 0]) / N


def yolo_loss_ref(predictions, target, *, S=7, B=2, num_classes=6,
                  lambda_coord=5.0, lambda_noobj=0.5):
    """Pure-JAX reference mirroring the PyTorch module."""
    N = predictions.shape[0]
    pred_boxes = predictions[..., :B * 5].reshape(N, S, S, B, 5)
    pred_class = predictions[..., B * 5:]
    target_box = target[..., :5]
    target_class = target[..., 5:]
    obj_mask = target_box[..., 4] > 0
    tbe = jnp.broadcast_to(target_box[:, :, :, None, :], (N, S, S, B, 5))

    def to_xyxy(b):
        cx, cy, w, h = b[..., 0], b[..., 1], b[..., 2], b[..., 3]
        return jnp.stack([cx - w / 2, cy - h / 2, cx + w / 2, cy + h / 2], -1)

    tb = to_xyxy(tbe[..., :4])
    pb = to_xyxy(pred_boxes[..., :4])
    iw = jnp.clip(jnp.minimum(pb[..., 2], tb[..., 2])
                  - jnp.maximum(pb[..., 0], tb[..., 0]), 0)
    ih = jnp.clip(jnp.minimum(pb[..., 3], tb[..., 3])
                  - jnp.maximum(pb[..., 1], tb[..., 1]), 0)
    inter = iw * ih
    ap = jnp.clip(pb[..., 2] - pb[..., 0], 0) * jnp.clip(pb[..., 3] - pb[..., 1], 0)
    at = jnp.clip(tb[..., 2] - tb[..., 0], 0) * jnp.clip(tb[..., 3] - tb[..., 1], 0)
    iou = inter / (ap + at - inter + 1e-6)
    best = jnp.argmax(iou, -1)
    resp = best[..., None] == jnp.arange(B)
    m = obj_mask[..., None] & resp
    mf = m.astype(jnp.float32)

    coord = jnp.sum(((pred_boxes[..., 0] - tbe[..., 0]) ** 2
                     + (pred_boxes[..., 1] - tbe[..., 1]) ** 2) * mf)
    pwh = jnp.sqrt(jnp.clip(pred_boxes[..., 2:4], 1e-6))
    twh = jnp.sqrt(tbe[..., 2:4] + 1e-6)
    size = jnp.sum(jnp.sum((pwh - twh) ** 2, -1) * mf)
    conf_o = jnp.sum((pred_boxes[..., 4] - tbe[..., 4]) ** 2 * mf)
    conf_n = jnp.sum(pred_boxes[..., 4] ** 2 * (1.0 - mf))
    cls = jnp.sum(jnp.sum((pred_class - target_class) ** 2, -1)
                  * obj_mask.astype(jnp.float32))
    total = lambda_coord * (coord + size) + conf_o + lambda_noobj * conf_n + cls
    return total / N


if __name__ == "__main__":
    S, B, C, N = 7, 2, 6, 2
    key = jax.random.PRNGKey(0)
    k1, k2, k3, k4 = jax.random.split(key, 4)

    # predictions: raw network outputs in [0, 1)
    predictions = jax.random.uniform(k1, (N, S, S, B * 5 + C), dtype=jnp.float32)

    # target: valid boxes (x,y,w,h in (0,1)), binary conf, one-hot classes
    boxes = jax.random.uniform(k2, (N, S, S, 4), dtype=jnp.float32,
                               minval=0.05, maxval=0.95)
    conf = (jax.random.uniform(k3, (N, S, S, 1)) > 0.6).astype(jnp.float32)
    cls = jax.nn.one_hot(jax.random.randint(k4, (N, S, S), 0, C), C,
                         dtype=jnp.float32)
    target = jnp.concatenate([boxes, conf, cls], axis=-1)

    loss = yolo_loss_pallas(predictions, target, S=S, B=B, num_classes=C)
    loss = jax.block_until_ready(loss)

    ref = yolo_loss_ref(predictions, target, S=S, B=B, num_classes=C)
    assert jnp.allclose(loss, ref, rtol=1e-4, atol=1e-4), (loss, ref)

    print("KERNEL_OK")
</pallas_src>

<mosaic_0001>
module attributes {stable_mosaic.version = 11 : i64} {
  func.func @kernel(%arg0: i32, %arg1: i32, %arg2: memref<16x8x128xf32, #tpu.memory_space<vmem>>, %arg3: memref<11x8x128xf32, #tpu.memory_space<vmem>>, %arg4: memref<1x8x128xf32, #tpu.memory_space<vmem>>, %arg5: memref<8x128xf32, #tpu.memory_space<vmem>>) attributes {dimension_semantics = [#tpu.dimension_semantics<parallel>, #tpu.dimension_semantics<arbitrary>], iteration_bounds = array<i64: 1, 1>, scalar_prefetch = 0 : i64, scratch_operands = 1 : i64, tpu.core_type = #tpu.core_type<tc>, window_params = [{transform_indices = @transform_0, window_bounds = array<i64: 16, 8, 128>}, {transform_indices = @transform_1, window_bounds = array<i64: 11, 8, 128>}, {transform_indices = @transform_2, window_bounds = array<i64: 1, 8, 128>}]} {
    %c0_i32 = arith.constant 0 : i32
    %0 = arith.cmpi eq, %arg1, %c0_i32 : i32
    %1 = arith.extui %0 : i1 to i32
    %c0_i32_0 = arith.constant 0 : i32
    %2 = arith.cmpi ne, %1, %c0_i32_0 : i32
    scf.if %2 {
      %cst_134 = arith.constant 0.000000e+00 : f32
      %251 = vector.broadcast %cst_134 : f32 to vector<8x128xf32>
      %c0_135 = arith.constant 0 : index
      %c0_136 = arith.constant 0 : index
      %252 = vector.load %arg5[%c0_135, %c0_136] : memref<8x128xf32, #tpu.memory_space<vmem>>, vector<8x128xf32>
      tpu.vector_store %arg5[%c0_135, %c0_136], %251 {strides = array<i32>} : memref<8x128xf32, #tpu.memory_space<vmem>>, vector<8x128xf32>,
    } else {
    }
    %c0 = arith.constant 0 : index
    %c0_1 = arith.constant 0 : index
    %c0_2 = arith.constant 0 : index
    %3 = vector.load %arg3[%c0, %c0_1, %c0_2] : memref<11x8x128xf32, #tpu.memory_space<vmem>>, vector<1x8x128xf32>
    %4 = vector.shape_cast %3 : vector<1x8x128xf32> to vector<8x128xf32>
    %c1 = arith.constant 1 : index
    %c0_3 = arith.constant 0 : index
    %c0_4 = arith.constant 0 : index
    %5 = vector.load %arg3[%c1, %c0_3, %c0_4] : memref<11x8x128xf32, #tpu.memory_space<vmem>>, vector<1x8x128xf32>
    %6 = vector.shape_cast %5 : vector<1x8x128xf32> to vector<8x128xf32>
    %c2 = arith.constant 2 : index
    %c0_5 = arith.constant 0 : index
    %c0_6 = arith.constant 0 : index
    %7 = vector.load %arg3[%c2, %c0_5, %c0_6] : memref<11x8x128xf32, #tpu.memory_space<vmem>>, vector<1x8x128xf32>
    %8 = vector.shape_cast %7 : vector<1x8x128xf32> to vector<8x128xf32>
    %c3 = arith.constant 3 : index
    %c0_7 = arith.constant 0 : index
    %c0_8 = arith.constant 0 : index
    %9 = vector.load %arg3[%c3, %c0_7, %c0_8] : memref<11x8x128xf32, #tpu.memory_space<vmem>>, vector<1x8x128xf32>
    %10 = vector.shape_cast %9 : vector<1x8x128xf32> to vector<8x128xf32>
    %c4 = arith.constant 4 : index
    %c0_9 = arith.constant 0 : index
    %c0_10 = arith.constant 0 : index
    %11 = vector.load %arg3[%c4, %c0_9, %c0_10] : memref<11x8x128xf32, #tpu.memory_space<vmem>>, vector<1x8x128xf32>
    %12 = vector.shape_cast %11 : vector<1x8x128xf32> to vector<8x128xf32>
    %cst = arith.constant 0.000000e+00 : f32
    %13 = vector.broadcast %cst : f32 to vector<8x128xf32>
    %14 = arith.cmpf ogt, %12, %13 : vector<8x128xf32>
    %cst_11 = arith.constant 5.000000e-01 : f32
    %15 = vector.broadcast %cst_11 : f32 to vector<8x128xf32>
    %16 = arith.mulf %8, %15 : vector<8x128xf32>
    %17 = arith.subf %4, %16 : vector<8x128xf32>
    %cst_12 = arith.constant 5.000000e-01 : f32
    %18 = vector.broadcast %cst_12 : f32 to vector<8x128xf32>
    %19 = arith.mulf %10, %18 : vector<8x128xf32>
    %20 = arith.subf %6, %19 : vector<8x128xf32>
    %cst_13 = arith.constant 5.000000e-01 : f32
    %21 = vector.broadcast %cst_13 : f32 to vector<8x128xf32>
    %22 = arith.mulf %8, %21 : vector<8x128xf32>
    %23 = arith.addf %4, %22 : vector<8x128xf32>
    %cst_14 = arith.constant 5.000000e-01 : f32
    %24 = vector.broadcast %cst_14 : f32 to vector<8x128xf32>
    %25 = arith.mulf %10, %24 : vector<8x128xf32>
    %26 = arith.addf %6, %25 : vector<8x128xf32>
    %cst_15 = arith.constant 0.000000e+00 : f32
    %27 = vector.broadcast %cst_15 : f32 to vector<8x128xf32>
    %28 = arith.maximumf %8, %27 : vector<8x128xf32>
    %cst_16 = arith.constant 0.000000e+00 : f32
    %29 = vector.broadcast %cst_16 : f32 to vector<8x128xf32>
    %30 = arith.maximumf %10, %29 : vector<8x128xf32>
    %31 = arith.mulf %28, %30 : vector<8x128xf32>
    %c0_17 = arith.constant 0 : index
    %c0_18 = arith.constant 0 : index
    %c0_19 = arith.constant 0 : index
    %32 = vector.load %arg2[%c0_17, %c0_18, %c0_19] : memref<16x8x128xf32, #tpu.memory_space<vmem>>, vector<1x8x128xf32>
    %33 = vector.shape_cast %32 : vector<1x8x128xf32> to vector<8x128xf32>
    %c1_20 = arith.constant 1 : index
    %c0_21 = arith.constant 0 : index
    %c0_22 = arith.constant 0 : index
    %34 = vector.load %arg2[%c1_20, %c0_21, %c0_22] : memref<16x8x128xf32, #tpu.memory_space<vmem>>, vector<1x8x128xf32>
    %35 = vector.shape_cast %34 : vector<1x8x128xf32> to vector<8x128xf32>
    %c2_23 = arith.constant 2 : index
    %c0_24 = arith.constant 0 : index
    %c0_25 = arith.constant 0 : index
    %36 = vector.load %arg2[%c2_23, %c0_24, %c0_25] : memref<16x8x128xf32, #tpu.memory_space<vmem>>, vector<1x8x128xf32>
    %37 = vector.shape_cast %36 : vector<1x8x128xf32> to vector<8x128xf32>
    %c3_26 = arith.constant 3 : index
    %c0_27 = arith.constant 0 : index
    %c0_28 = arith.constant 0 : index
    %38 = vector.load %arg2[%c3_26, %c0_27, %c0_28] : memref<16x8x128xf32, #tpu.memory_space<vmem>>, vector<1x8x128xf32>
    %39 = vector.shape_cast %38 : vector<1x8x128xf32> to vector<8x128xf32>
    %cst_29 = arith.constant 5.000000e-01 : f32
    %40 = vector.broadcast %cst_29 : f32 to vector<8x128xf32>
    %41 = arith.mulf %37, %40 : vector<8x128xf32>
    %42 = arith.subf %33, %41 : vector<8x128xf32>
    %cst_30 = arith.constant 5.000000e-01 : f32
    %43 = vector.broadcast %cst_30 : f32 to vector<8x128xf32>
    %44 = arith.mulf %39, %43 : vector<8x128xf32>
    %45 = arith.subf %35, %44 : vector<8x128xf32>
    %cst_31 = arith.constant 5.000000e-01 : f32
    %46 = vector.broadcast %cst_31 : f32 to vector<8x128xf32>
    %47 = arith.mulf %37, %46 : vector<8x128xf32>
    %48 = arith.addf %33, %47 : vector<8x128xf32>
    %cst_32 = arith.constant 5.000000e-01 : f32
    %49 = vector.broadcast %cst_32 : f32 to vector<8x128xf32>
    %50 = arith.mulf %39, %49 : vector<8x128xf32>
    %51 = arith.addf %35, %50 : vector<8x128xf32>
    %52 = arith.minimumf %48, %23 : vector<8x128xf32>
    %53 = arith.maximumf %42, %17 : vector<8x128xf32>
    %54 = arith.subf %52, %53 : vector<8x128xf32>
    %cst_33 = arith.constant 0.000000e+00 : f32
    %55 = vector.broadcast %cst_33 : f32 to vector<8x128xf32>
    %56 = arith.maximumf %54, %55 : vector<8x128xf32>
    %57 = arith.minimumf %51, %26 : vector<8x128xf32>
    %58 = arith.maximumf %45, %20 : vector<8x128xf32>
    %59 = arith.subf %57, %58 : vector<8x128xf32>
    %cst_34 = arith.constant 0.000000e+00 : f32
    %60 = vector.broadcast %cst_34 : f32 to vector<8x128xf32>
    %61 = arith.maximumf %59, %60 : vector<8x128xf32>
    %62 = arith.mulf %56, %61 : vector<8x128xf32>
    %cst_35 = arith.constant 0.000000e+00 : f32
    %63 = vector.broadcast %cst_35 : f32 to vector<8x128xf32>
    %64 = arith.maximumf %37, %63 : vector<8x128xf32>
    %cst_36 = arith.constant 0.000000e+00 : f32
    %65 = vector.broadcast %cst_36 : f32 to vector<8x128xf32>
    %66 = arith.maximumf %39, %65 : vector<8x128xf32>
    %67 = arith.mulf %64, %66 : vector<8x128xf32>
    %68 = arith.addf %67, %31 : vector<8x128xf32>
    %69 = arith.subf %68, %62 : vector<8x128xf32>
    %cst_37 = arith.constant 9.99999997E-7 : f32
    %70 = vector.broadcast %cst_37 : f32 to vector<8x128xf32>
    %71 = arith.addf %69, %70 : vector<8x128xf32>
    %c5 = arith.constant 5 : index
    %c0_38 = arith.constant 0 : index
    %c0_39 = arith.constant 0 : index
    %72 = vector.load %arg2[%c5, %c0_38, %c0_39] : memref<16x8x128xf32, #tpu.memory_space<vmem>>, vector<1x8x128xf32>
    %73 = vector.shape_cast %72 : vector<1x8x128xf32> to vector<8x128xf32>
    %c6 = arith.constant 6 : index
    %c0_40 = arith.constant 0 : index
    %c0_41 = arith.constant 0 : index
    %74 = vector.load %arg2[%c6, %c0_40, %c0_41] : memref<16x8x128xf32, #tpu.memory_space<vmem>>, vector<1x8x128xf32>
    %75 = vector.shape_cast %74 : vector<1x8x128xf32> to vector<8x128xf32>
    %c7 = arith.constant 7 : index
    %c0_42 = arith.constant 0 : index
    %c0_43 = arith.constant 0 : index
    %76 = vector.load %arg2[%c7, %c0_42, %c0_43] : memref<16x8x128xf32, #tpu.memory_space<vmem>>, vector<1x8x128xf32>
    %77 = vector.shape_cast %76 : vector<1x8x128xf32> to vector<8x128xf32>
    %c8 = arith.constant 8 : index
    %c0_44 = arith.constant 0 : index
    %c0_45 = arith.constant 0 : index
    %78 = vector.load %arg2[%c8, %c0_44, %c0_45] : memref<16x8x128xf32, #tpu.memory_space<vmem>>, vector<1x8x128xf32>
    %79 = vector.shape_cast %78 : vector<1x8x128xf32> to vector<8x128xf32>
    %cst_46 = arith.constant 5.000000e-01 : f32
    %80 = vector.broadcast %cst_46 : f32 to vector<8x128xf32>
    %81 = arith.mulf %77, %80 : vector<8x128xf32>
    %82 = arith.subf %73, %81 : vector<8x128xf32>
    %cst_47 = arith.constant 5.000000e-01 : f32
    %83 = vector.broadcast %cst_47 : f32 to vector<8x128xf32>
    %84 = arith.mulf %79, %83 : vector<8x128xf32>
    %85 = arith.subf %75, %84 : vector<8x128xf32>
    %cst_48 = arith.constant 5.000000e-01 : f32
    %86 = vector.broadcast %cst_48 : f32 to vector<8x128xf32>
    %87 = arith.mulf %77, %86 : vector<8x128xf32>
    %88 = arith.addf %73, %87 : vector<8x128xf32>
    %cst_49 = arith.constant 5.000000e-01 : f32
    %89 = vector.broadcast %cst_49 : f32 to vector<8x128xf32>
    %90 = arith.mulf %79, %89 : vector<8x128xf32>
    %91 = arith.addf %75, %90 : vector<8x128xf32>
    %92 = arith.minimumf %88, %23 : vector<8x128xf32>
    %93 = arith.maximumf %82, %17 : vector<8x128xf32>
    %94 = arith.subf %92, %93 : vector<8x128xf32>
    %cst_50 = arith.constant 0.000000e+00 : f32
    %95 = vector.broadcast %cst_50 : f32 to vector<8x128xf32>
    %96 = arith.maximumf %94, %95 : vector<8x128xf32>
    %97 = arith.minimumf %91, %26 : vector<8x128xf32>
    %98 = arith.maximumf %85, %20 : vector<8x128xf32>
    %99 = arith.subf %97, %98 : vector<8x128xf32>
    %cst_51 = arith.constant 0.000000e+00 : f32
    %100 = vector.broadcast %cst_51 : f32 to vector<8x128xf32>
    %101 = arith.maximumf %99, %100 : vector<8x128xf32>
    %102 = arith.mulf %96, %101 : vector<8x128xf32>
    %cst_52 = arith.constant 0.000000e+00 : f32
    %103 = vector.broadcast %cst_52 : f32 to vector<8x128xf32>
    %104 = arith.maximumf %77, %103 : vector<8x128xf32>
    %cst_53 = arith.constant 0.000000e+00 : f32
    %105 = vector.broadcast %cst_53 : f32 to vector<8x128xf32>
    %106 = arith.maximumf %79, %105 : vector<8x128xf32>
    %107 = arith.mulf %104, %106 : vector<8x128xf32>
    %108 = arith.addf %107, %31 : vector<8x128xf32>
    %109 = arith.subf %108, %102 : vector<8x128xf32>
    %cst_54 = arith.constant 9.99999997E-7 : f32
    %110 = vector.broadcast %cst_54 : f32 to vector<8x128xf32>
    %111 = arith.addf %109, %110 : vector<8x128xf32>
    %112 = arith.mulf %62, %111 : vector<8x128xf32>
    %113 = arith.mulf %102, %71 : vector<8x128xf32>
    %114 = arith.cmpf oge, %112, %113 : vector<8x128xf32>
    %cst_55 = arith.constant dense<true> : vector<8x128xi1>
    %115 = arith.xori %114, %cst_55 : vector<8x128xi1>
    %cst_56 = arith.constant 9.99999997E-7 : f32
    %116 = vector.broadcast %cst_56 : f32 to vector<8x128xf32>
    %117 = arith.addf %8, %116 : vector<8x128xf32>
    %118 = math.sqrt %117 : vector<8x128xf32>
    %cst_57 = arith.constant 9.99999997E-7 : f32
    %119 = vector.broadcast %cst_57 : f32 to vector<8x128xf32>
    %120 = arith.addf %10, %119 : vector<8x128xf32>
    %121 = math.sqrt %120 : vector<8x128xf32>
    %cst_58 = arith.constant 0.000000e+00 : f32
    %122 = vector.broadcast %cst_58 : f32 to vector<8x128xf32>
    %c0_59 = arith.constant 0 : index
    %c0_60 = arith.constant 0 : index
    %c0_61 = arith.constant 0 : index
    %123 = vector.load %arg2[%c0_59, %c0_60, %c0_61] : memref<16x8x128xf32, #tpu.memory_space<vmem>>, vector<1x8x128xf32>
    %124 = vector.shape_cast %123 : vector<1x8x128xf32> to vector<8x128xf32>
    %c1_62 = arith.constant 1 : index
    %c0_63 = arith.constant 0 : index
    %c0_64 = arith.constant 0 : index
    %125 = vector.load %arg2[%c1_62, %c0_63, %c0_64] : memref<16x8x128xf32, #tpu.memory_space<vmem>>, vector<1x8x128xf32>
    %126 = vector.shape_cast %125 : vector<1x8x128xf32> to vector<8x128xf32>
    %c2_65 = arith.constant 2 : index
    %c0_66 = arith.constant 0 : index
    %c0_67 = arith.constant 0 : index
    %127 = vector.load %arg2[%c2_65, %c0_66, %c0_67] : memref<16x8x128xf32, #tpu.memory_space<vmem>>, vector<1x8x128xf32>
    %128 = vector.shape_cast %127 : vector<1x8x128xf32> to vector<8x128xf32>
    %c3_68 = arith.constant 3 : index
    %c0_69 = arith.constant 0 : index
    %c0_70 = arith.constant 0 : index
    %129 = vector.load %arg2[%c3_68, %c0_69, %c0_70] : memref<16x8x128xf32, #tpu.memory_space<vmem>>, vector<1x8x128xf32>
    %130 = vector.shape_cast %129 : vector<1x8x128xf32> to vector<8x128xf32>
    %c4_71 = arith.constant 4 : index
    %c0_72 = arith.constant 0 : index
    %c0_73 = arith.constant 0 : index
    %131 = vector.load %arg2[%c4_71, %c0_72, %c0_73] : memref<16x8x128xf32, #tpu.memory_space<vmem>>, vector<1x8x128xf32>
    %132 = vector.shape_cast %131 : vector<1x8x128xf32> to vector<8x128xf32>
    %133 = arith.subf %124, %4 : vector<8x128xf32>
    %134 = arith.mulf %133, %133 : vector<8x128xf32>
    %135 = arith.subf %126, %6 : vector<8x128xf32>
    %136 = arith.mulf %135, %135 : vector<8x128xf32>
    %137 = arith.addf %134, %136 : vector<8x128xf32>
    %cst_74 = arith.constant 9.99999997E-7 : f32
    %138 = vector.broadcast %cst_74 : f32 to vector<8x128xf32>
    %139 = arith.maximumf %128, %138 : vector<8x128xf32>
    %140 = math.sqrt %139 : vector<8x128xf32>
    %141 = arith.subf %140, %118 : vector<8x128xf32>
    %cst_75 = arith.constant 9.99999997E-7 : f32
    %142 = vector.broadcast %cst_75 : f32 to vector<8x128xf32>
    %143 = arith.maximumf %130, %142 : vector<8x128xf32>
    %144 = math.sqrt %143 : vector<8x128xf32>
    %145 = arith.subf %144, %121 : vector<8x128xf32>
    %146 = arith.mulf %141, %141 : vector<8x128xf32>
    %147 = arith.mulf %145, %145 : vector<8x128xf32>
    %148 = arith.addf %146, %147 : vector<8x128xf32>
    %149 = arith.subf %132, %12 : vector<8x128xf32>
    %150 = arith.mulf %149, %149 : vector<8x128xf32>
    %151 = arith.mulf %132, %132 : vector<8x128xf32>
    %152 = arith.andi %14, %114 : vector<8x128xi1>
    %153 = arith.addf %137, %148 : vector<8x128xf32>
    %cst_76 = arith.constant 5.000000e+00 : f32
    %154 = vector.broadcast %cst_76 : f32 to vector<8x128xf32>
    %155 = arith.mulf %154, %153 : vector<8x128xf32>
    %156 = arith.addf %155, %150 : vector<8x128xf32>
    %cst_77 = arith.constant 5.000000e-01 : f32
    %157 = vector.broadcast %cst_77 : f32 to vector<8x128xf32>
    %158 = arith.mulf %157, %151 : vector<8x128xf32>
    %159 = arith.select %152, %156, %158 : vector<8x128xi1>, vector<8x128xf32>
    %160 = arith.addf %122, %159 : vector<8x128xf32>
    %c5_78 = arith.constant 5 : index
    %c0_79 = arith.constant 0 : index
    %c0_80 = arith.constant 0 : index
    %161 = vector.load %arg2[%c5_78, %c0_79, %c0_80] : memref<16x8x128xf32, #tpu.memory_space<vmem>>, vector<1x8x128xf32>
    %162 = vector.shape_cast %161 : vector<1x8x128xf32> to vector<8x128xf32>
    %c6_81 = arith.constant 6 : index
    %c0_82 = arith.constant 0 : index
    %c0_83 = arith.constant 0 : index
    %163 = vector.load %arg2[%c6_81, %c0_82, %c0_83] : memref<16x8x128xf32, #tpu.memory_space<vmem>>, vector<1x8x128xf32>
    %164 = vector.shape_cast %163 : vector<1x8x128xf32> to vector<8x128xf32>
    %c7_84 = arith.constant 7 : index
    %c0_85 = arith.constant 0 : index
    %c0_86 = arith.constant 0 : index
    %165 = vector.load %arg2[%c7_84, %c0_85, %c0_86] : memref<16x8x128xf32, #tpu.memory_space<vmem>>, vector<1x8x128xf32>
    %166 = vector.shape_cast %165 : vector<1x8x128xf32> to vector<8x128xf32>
    %c8_87 = arith.constant 8 : index
    %c0_88 = arith.constant 0 : index
    %c0_89 = arith.constant 0 : index
    %167 = vector.load %arg2[%c8_87, %c0_88, %c0_89] : memref<16x8x128xf32, #tpu.memory_space<vmem>>, vector<1x8x128xf32>
    %168 = vector.shape_cast %167 : vector<1x8x128xf32> to vector<8x128xf32>
    %c9 = arith.constant 9 : index
    %c0_90 = arith.constant 0 : index
    %c0_91 = arith.constant 0 : index
    %169 = vector.load %arg2[%c9, %c0_90, %c0_91] : memref<16x8x128xf32, #tpu.memory_space<vmem>>, vector<1x8x128xf32>
    %170 = vector.shape_cast %169 : vector<1x8x128xf32> to vector<8x128xf32>
    %171 = arith.subf %162, %4 : vector<8x128xf32>
    %172 = arith.mulf %171, %171 : vector<8x128xf32>
    %173 = arith.subf %164, %6 : vector<8x128xf32>
    %174 = arith.mulf %173, %173 : vector<8x128xf32>
    %175 = arith.addf %172, %174 : vector<8x128xf32>
    %cst_92 = arith.constant 9.99999997E-7 : f32
    %176 = vector.broadcast %cst_92 : f32 to vector<8x128xf32>
    %177 = arith.maximumf %166, %176 : vector<8x128xf32>
    %178 = math.sqrt %177 : vector<8x128xf32>
    %179 = arith.subf %178, %118 : vector<8x128xf32>
    %cst_93 = arith.constant 9.99999997E-7 : f32
    %180 = vector.broadcast %cst_93 : f32 to vector<8x128xf32>
    %181 = arith.maximumf %168, %180 : vector<8x128xf32>
    %182 = math.sqrt %181 : vector<8x128xf32>
    %183 = arith.subf %182, %121 : vector<8x128xf32>
    %184 = arith.mulf %179, %179 : vector<8x128xf32>
    %185 = arith.mulf %183, %183 : vector<8x128xf32>
    %186 = arith.addf %184, %185 : vector<8x128xf32>
    %187 = arith.subf %170, %12 : vector<8x128xf32>
    %188 = arith.mulf %187, %187 : vector<8x128xf32>
    %189 = arith.mulf %170, %170 : vector<8x128xf32>
    %190 = arith.andi %14, %115 : vector<8x128xi1>
    %191 = arith.addf %175, %186 : vector<8x128xf32>
    %cst_94 = arith.constant 5.000000e+00 : f32
    %192 = vector.broadcast %cst_94 : f32 to vector<8x128xf32>
    %193 = arith.mulf %192, %191 : vector<8x128xf32>
    %194 = arith.addf %193, %188 : vector<8x128xf32>
    %cst_95 = arith.constant 5.000000e-01 : f32
    %195 = vector.broadcast %cst_95 : f32 to vector<8x128xf32>
    %196 = arith.mulf %195, %189 : vector<8x128xf32>
    %197 = arith.select %190, %194, %196 : vector<8x128xi1>, vector<8x128xf32>
    %198 = arith.addf %160, %197 : vector<8x128xf32>
    %cst_96 = arith.constant 0.000000e+00 : f32
    %199 = vector.broadcast %cst_96 : f32 to vector<8x128xf32>
    %c10 = arith.constant 10 : index
    %c0_97 = arith.constant 0 : index
    %c0_98 = arith.constant 0 : index
    %200 = vector.load %arg2[%c10, %c0_97, %c0_98] : memref<16x8x128xf32, #tpu.memory_space<vmem>>, vector<1x8x128xf32>
    %201 = vector.shape_cast %200 : vector<1x8x128xf32> to vector<8x128xf32>
    %c5_99 = arith.constant 5 : index
    %c0_100 = arith.constant 0 : index
    %c0_101 = arith.constant 0 : index
    %202 = vector.load %arg3[%c5_99, %c0_100, %c0_101] : memref<11x8x128xf32, #tpu.memory_space<vmem>>, vector<1x8x128xf32>
    %203 = vector.shape_cast %202 : vector<1x8x128xf32> to vector<8x128xf32>
    %204 = arith.subf %201, %203 : vector<8x128xf32>
    %205 = arith.mulf %204, %204 : vector<8x128xf32>
    %206 = arith.addf %199, %205 : vector<8x128xf32>
    %c11 = arith.constant 11 : index
    %c0_102 = arith.constant 0 : index
    %c0_103 = arith.constant 0 : index
    %207 = vector.load %arg2[%c11, %c0_102, %c0_103] : memref<16x8x128xf32, #tpu.memory_space<vmem>>, vector<1x8x128xf32>
    %208 = vector.shape_cast %207 : vector<1x8x128xf32> to vector<8x128xf32>
    %c6_104 = arith.constant 6 : index
    %c0_105 = arith.constant 0 : index
    %c0_106 = arith.constant 0 : index
    %209 = vector.load %arg3[%c6_104, %c0_105, %c0_106] : memref<11x8x128xf32, #tpu.memory_space<vmem>>, vector<1x8x128xf32>
    %210 = vector.shape_cast %209 : vector<1x8x128xf32> to vector<8x128xf32>
    %211 = arith.subf %208, %210 : vector<8x128xf32>
    %212 = arith.mulf %211, %211 : vector<8x128xf32>
    %213 = arith.addf %206, %212 : vector<8x128xf32>
    %c12 = arith.constant 12 : index
    %c0_107 = arith.constant 0 : index
    %c0_108 = arith.constant 0 : index
    %214 = vector.load %arg2[%c12, %c0_107, %c0_108] : memref<16x8x128xf32, #tpu.memory_space<vmem>>, vector<1x8x128xf32>
    %215 = vector.shape_cast %214 : vector<1x8x128xf32> to vector<8x128xf32>
    %c7_109 = arith.constant 7 : index
    %c0_110 = arith.constant 0 : index
    %c0_111 = arith.constant 0 : index
    %216 = vector.load %arg3[%c7_109, %c0_110, %c0_111] : memref<11x8x128xf32, #tpu.memory_space<vmem>>, vector<1x8x128xf32>
    %217 = vector.shape_cast %216 : vector<1x8x128xf32> to vector<8x128xf32>
    %218 = arith.subf %215, %217 : vector<8x128xf32>
    %219 = arith.mulf %218, %218 : vector<8x128xf32>
    %220 = arith.addf %213, %219 : vector<8x128xf32>
    %c13 = arith.constant 13 : index
    %c0_112 = arith.constant 0 : index
    %c0_113 = arith.constant 0 : index
    %221 = vector.load %arg2[%c13, %c0_112, %c0_113] : memref<16x8x128xf32, #tpu.memory_space<vmem>>, vector<1x8x128xf32>
    %222 = vector.shape_cast %221 : vector<1x8x128xf32> to vector<8x128xf32>
    %c8_114 = arith.constant 8 : index
    %c0_115 = arith.constant 0 : index
    %c0_116 = arith.constant 0 : index
    %223 = vector.load %arg3[%c8_114, %c0_115, %c0_116] : memref<11x8x128xf32, #tpu.memory_space<vmem>>, vector<1x8x128xf32>
    %224 = vector.shape_cast %223 : vector<1x8x128xf32> to vector<8x128xf32>
    %225 = arith.subf %222, %224 : vector<8x128xf32>
    %226 = arith.mulf %225, %225 : vector<8x128xf32>
    %227 = arith.addf %220, %226 : vector<8x128xf32>
    %c14 = arith.constant 14 : index
    %c0_117 = arith.constant 0 : index
    %c0_118 = arith.constant 0 : index
    %228 = vector.load %arg2[%c14, %c0_117, %c0_118] : memref<16x8x128xf32, #tpu.memory_space<vmem>>, vector<1x8x128xf32>
    %229 = vector.shape_cast %228 : vector<1x8x128xf32> to vector<8x128xf32>
    %c9_119 = arith.constant 9 : index
    %c0_120 = arith.constant 0 : index
    %c0_121 = arith.constant 0 : index
    %230 = vector.load %arg3[%c9_119, %c0_120, %c0_121] : memref<11x8x128xf32, #tpu.memory_space<vmem>>, vector<1x8x128xf32>
    %231 = vector.shape_cast %230 : vector<1x8x128xf32> to vector<8x128xf32>
    %232 = arith.subf %229, %231 : vector<8x128xf32>
    %233 = arith.mulf %232, %232 : vector<8x128xf32>
    %234 = arith.addf %227, %233 : vector<8x128xf32>
    %c15 = arith.constant 15 : index
    %c0_122 = arith.constant 0 : index
    %c0_123 = arith.constant 0 : index
    %235 = vector.load %arg2[%c15, %c0_122, %c0_123] : memref<16x8x128xf32, #tpu.memory_space<vmem>>, vector<1x8x128xf32>
    %236 = vector.shape_cast %235 : vector<1x8x128xf32> to vector<8x128xf32>
    %c10_124 = arith.constant 10 : index
    %c0_125 = arith.constant 0 : index
    %c0_126 = arith.constant 0 : index
    %237 = vector.load %arg3[%c10_124, %c0_125, %c0_126] : memref<11x8x128xf32, #tpu.memory_space<vmem>>, vector<1x8x128xf32>
    %238 = vector.shape_cast %237 : vector<1x8x128xf32> to vector<8x128xf32>
    %239 = arith.subf %236, %238 : vector<8x128xf32>
    %240 = arith.mulf %239, %239 : vector<8x128xf32>
    %241 = arith.addf %234, %240 : vector<8x128xf32>
    %cst_127 = arith.constant 0.000000e+00 : f32
    %242 = vector.broadcast %cst_127 : f32 to vector<8x128xf32>
    %243 = arith.select %14, %241, %242 : vector<8x128xi1>, vector<8x128xf32>
    %244 = arith.addf %198, %243 : vector<8x128xf32>
    %c0_128 = arith.constant 0 : index
    %c0_129 = arith.constant 0 : index
    %245 = vector.load %arg5[%c0_128, %c0_129] : memref<8x128xf32, #tpu.memory_space<vmem>>, vector<8x128xf32>
    %246 = arith.addf %245, %244 : vector<8x128xf32>
    %c0_130 = arith.constant 0 : index
    %c0_131 = arith.constant 0 : index
    %247 = vector.load %arg5[%c0_130, %c0_131] : memref<8x128xf32, #tpu.memory_space<vmem>>, vector<8x128xf32>
    tpu.vector_store %arg5[%c0_130, %c0_131], %246 {strides = array<i32>} : memref<8x128xf32, #tpu.memory_space<vmem>>, vector<8x128xf32>,
    %c0_i32_132 = arith.constant 0 : i32
    %248 = arith.cmpi eq, %arg1, %c0_i32_132 : i32
    %249 = arith.extui %248 : i1 to i32
    %c0_i32_133 = arith.constant 0 : i32
    %250 = arith.cmpi ne, %249, %c0_i32_133 : i32
    scf.if %250 {
      %c0_134 = arith.constant 0 : index
      %c0_135 = arith.constant 0 : index
      %251 = vector.load %arg5[%c0_134, %c0_135] : memref<8x128xf32, #tpu.memory_space<vmem>>, vector<8x128xf32>
      %252 = vector.shape_cast %251 : vector<8x128xf32> to vector<1x8x128xf32>
      %cst_136 = arith.constant dense<0.000000e+00> : vector<1xf32>
      %253 = vector.multi_reduction <add>, %252, %cst_136 [1, 2] : vector<1x8x128xf32> to vector<1xf32>
      %254 = vector.shape_cast %253 : vector<1xf32> to vector<1x1x1xf32>
      %255 = vector.extract %254[0, 0, 0] : f32 from vector<1x1x1xf32>
      %256 = vector.broadcast %255 : f32 to vector<1x8x128xf32>
      %c0_137 = arith.constant 0 : index
      %c0_138 = arith.constant 0 : index
      %c0_139 = arith.constant 0 : index
      %257 = vector.load %arg4[%c0_137, %c0_138, %c0_139] : memref<1x8x128xf32, #tpu.memory_space<vmem>>, vector<1x8x128xf32>
      tpu.vector_store %arg4[%c0_137, %c0_138, %c0_139], %256 {strides = array<i32>} : memref<1x8x128xf32, #tpu.memory_space<vmem>>, vector<1x8x128xf32>,
    } else {
    }
    return
  }
  func.func @transform_0(%arg0: i32, %arg1: i32) -> (i32, i32, i32) {
    %c1_i32 = arith.constant 1 : i32
    %0 = arith.muli %arg0, %c1_i32 : i32
    %1 = arith.addi %0, %arg1 : i32
    %c0_i32 = arith.constant 0 : i32
    %c0_i32_0 = arith.constant 0 : i32
    %c0_i32_1 = arith.constant 0 : i32
    return %c0_i32, %1, %c0_i32_0 : i32, i32, i32
  }
  func.func @transform_1(%arg0: i32, %arg1: i32) -> (i32, i32, i32) {
    %c1_i32 = arith.constant 1 : i32
    %0 = arith.muli %arg0, %c1_i32 : i32
    %1 = arith.addi %0, %arg1 : i32
    %c0_i32 = arith.constant 0 : i32
    %c0_i32_0 = arith.constant 0 : i32
    %c0_i32_1 = arith.constant 0 : i32
    return %c0_i32, %1, %c0_i32_0 : i32, i32, i32
  }
  func.func @transform_2(%arg0: i32, %arg1: i32) -> (i32, i32, i32) {
    %c0_i32 = arith.constant 0 : i32
    %c0_i32_0 = arith.constant 0 : i32
    %c0_i32_1 = arith.constant 0 : i32
    return %arg0, %c0_i32, %c0_i32_0 : i32, i32, i32
  }
}

</mosaic_0001>

<bundles_post_ra>
// kernel: tpu_custom_call.1
= control target key start
LH: loop header
LB: loop body
LE: loop exit
PB: predicated region body
PF: predicated region fallthrough
CT: control target
= control target key end

     0   :  { %7 = vsyncpa [#allocation4], 0  ;;  %s568_s0 = inlined_call_operand.hbm [shape: f32[16,8,128], index: 0, kind: input, shape index: {}]   ;;  %s569_s1 = inlined_call_operand.hbm [shape: f32[11,8,128], index: 1, kind: input, shape index: {}]   ;;  %s570_s2 = inlined_call_operand.hbm [shape: f32[1,8,128], index: 2, kind: output, shape index: {}]  }
   0x1   :  { %8 = vsyncpa [#allocation7], 0 }
   0x2   :  { %9 = vsyncpa [#allocation5], 0  ;;  %s395_s9 = smov [#allocation3]   ;;  %s323_s13 = scalar_lea.hbm %s568_s0, 2048 }
   0x3   :  { %s18_s10 = sshll.u32 %s395_s9, 4  ;;  %p324_p0 = scmp.ne.s32.totalorder %s568_s0, %s323_s13  ;;  %s19_s10 = int_to_ptr.vmem [resolvable:$true] %s18_s10 }
   0x4   :  { %p327_p1 = scmp.lt.u32.totalorder %s323_s13, %s568_s0 }
   0x6   :  { %p329_p2 = pnand %p327_p1, %p324_p0 }
   0x8   :  { %332 = shalt.err (!%p329_p2)
}
   0x9   :  { %s333_s18 = scalar_lea.vmem %s19_s10, 2048  ;;  %p338_p4 = scmp.lt.s32.totalorder %s19_s10, %s19_s10 }
   0xa   :  { %p334_p3 = scmp.ne.s32.totalorder %s19_s10, %s333_s18  ;;  %p339_p5 = scmp.lt.s32.totalorder %s333_s18, %s333_s18 }
   0xc   :  { %p340_p6 = por %p339_p5, %p338_p4 }
   0xe   :  { %p341_p7 = pnand %p340_p6, %p334_p3 }
  0x10   :  { %344 = shalt.err (!%p341_p7)
}
  0x11   :  { %s396_s19 = smov 128   ;;  %s397_s20 = smov 8  }
  0x12   :  { %24 = dma.hbm_to_vmem [thread:$0]  %s568_s0, 2048, %s19_s10, [#allocation4], %s396_s19, %s396_s19, %s397_s20  }
  0x13   :  { %s398_s23 = smov [#allocation6]   ;;  %s345_s27 = scalar_lea.hbm %s569_s1, 1408 }
  0x14   :  { %s33_s24 = sshll.u32 %s398_s23, 4  ;;  %p346_p8 = scmp.ne.s32.totalorder %s569_s1, %s345_s27  ;;  %s34_s24 = int_to_ptr.vmem [resolvable:$true] %s33_s24 }
  0x15   :  { %p349_p9 = scmp.lt.u32.totalorder %s345_s27, %s569_s1 }
  0x17   :  { %p351_p10 = pnand %p349_p9, %p346_p8 }
  0x19   :  { %354 = shalt.err (!%p351_p10)
}
  0x1a   :  { %s355_s4 = scalar_lea.vmem %s34_s24, 1408  ;;  %p360_p12 = scmp.lt.s32.totalorder %s34_s24, %s34_s24 }
  0x1b   :  { %p356_p11 = scmp.ne.s32.totalorder %s34_s24, %s355_s4  ;;  %p361_p13 = scmp.lt.s32.totalorder %s355_s4, %s355_s4 }
  0x1d   :  { %p362_p0 = por %p361_p13, %p360_p12 }
  0x1f   :  { %p363_p1 = pnand %p362_p0, %p356_p11 }
  0x21   :  { %366 = shalt.err (!%p363_p1)
}
  0x22   :  { %39 = dma.hbm_to_vmem [thread:$0]  %s569_s1, 1408, %s34_s24, [#allocation7], %s396_s19, %s396_s19, %s397_s20  }
  0x23   :  { %389 = dma.done.wait [#allocation4], 2048  }
  0x24   :  { %390 = vsyncadd [#allocation4], 4294965248 }
  0x25   :  { %391 = dma.done.wait [#allocation7], 1408  }
  0x26   :  { %392 = vsyncadd [#allocation7], 4294965888  ;;  %v440_v0 = vld [vmem:[#allocation6] sm:$0xff]  ;;  %v57_v1 = vld [vmem:[#allocation6 + $0x10] sm:$0xff]  ;;  %vm399_vm14 = vmmov 1   ;;  %s400_s1 = smov [#allocation8]  }
  0x27   :  { %v442_v2 = vld [vmem:[#allocation6 + $0x8] sm:$0xff]  ;;  %v59_v3 = vld [vmem:[#allocation6 + $0x18] sm:$0xff]  ;;  %v63_v4 = vmul.f32 0.5, %v57_v1  ;;  %v72_v5 = vld [vmem:[#allocation3] sm:$0xff]  ;;  %v69_v24 = vmax.f32 %v57_v1, 0.0  ;;  %s293_s6 = sshll.u32 %s400_s1, 4  ;;  %s294_s6 = int_to_ptr.vmem [resolvable:$true] %s293_s6 }
  0x28   :  { %v65_v6 = vmul.f32 0.5, %v59_v3  ;;  %v74_v7 = vld [vmem:[#allocation3 + $0x8] sm:$0xff]  ;;  %v76_v8 = vld [vmem:[#allocation3 + $0x10] sm:$0xff]  ;;  %v78_v9 = vld [vmem:[#allocation3 + $0x18] sm:$0xff]  ;;  %v70_v31 = vmax.f32 %v59_v3, 0.0  ;;  %v151_v61 = vsub.f32 %v72_v5, %v440_v0  ;;  %s367_s8 = scalar_lea.vmem %s294_s6, 128  ;;  %p372_p3 = scmp.lt.s32.totalorder %s294_s6, %s294_s6 }
  0x29   :  { %v64_v10 = vsub.f32 %v440_v0, %v63_v4  ;;  %v67_v11 = vadd.f32 %v63_v4, %v440_v0  ;;  %v79_v12 = vmul.f32 0.5, %v76_v8  ;;  %v81_v13 = vmul.f32 0.5, %v78_v9  ;;  %v448_v16 = vld [vmem:[#allocation3 + $0x28] sm:$0xff]  ;;  %v450_v21 = vld [vmem:[#allocation3 + $0x30] sm:$0xff]  ;;  %v105_v22 = vld [vmem:[#allocation3 + $0x38] sm:$0xff]  ;;  %p368_p2 = scmp.ne.s32.totalorder %s294_s6, %s367_s8  ;;  %p373_p4 = scmp.lt.s32.totalorder %s367_s8, %s367_s8 }
  0x2a   :  { %v66_v14 = vsub.f32 %v442_v2, %v65_v6  ;;  %v68_v15 = vadd.f32 %v65_v6, %v442_v2  ;;  %v107_v23 = vld [vmem:[#allocation3 + $0x40] sm:$0xff]  ;;  %v108_v25 = vmul.f32 0.5, %v105_v22  ;;  %v94_v36 = vmax.f32 %v76_v8, 0.0 }
  0x2b   :  { %v80_v17 = vsub.f32 %v72_v5, %v79_v12  ;;  %v82_v18 = vsub.f32 %v74_v7, %v81_v13  ;;  %v83_v19 = vadd.f32 %v79_v12, %v72_v5  ;;  %v84_v20 = vadd.f32 %v81_v13, %v74_v7  ;;  %p374_p5 = por %p373_p4, %p372_p3 }
  0x2c   :  { %v110_v26 = vmul.f32 0.5, %v107_v23  ;;  %v109_v32 = vsub.f32 %v448_v16, %v108_v25  ;;  %v112_v34 = vadd.f32 %v108_v25, %v448_v16  ;;  %v95_v37 = vmax.f32 %v78_v9, 0.0  ;;  %v242_v25 = vld [vmem:[#allocation6 + $0x38] sm:$0xff] }
  0x2d   :  { %v85_v27 = vmin.f32 %v83_v19, %v67_v11  ;;  %v86_v28 = vmax.f32 %v80_v17, %v64_v10  ;;  %v89_v29 = vmin.f32 %v84_v20, %v68_v15  ;;  %v90_v30 = vmax.f32 %v82_v18, %v66_v14  ;;  %v233_v17 = vld [vmem:[#allocation3 + $0x58] sm:$0xff]  ;;  %v235_v18 = vld [vmem:[#allocation6 + $0x30] sm:$0xff]  ;;  %p375_p6 = pnand %p374_p5, %p368_p2 }
  0x2e   :  { %v111_v33 = vsub.f32 %v450_v21, %v110_v26  ;;  %v113_v38 = vadd.f32 %v110_v26, %v450_v21  ;;  %v114_v40 = vmin.f32 %v112_v34, %v67_v11  ;;  %v115_v41 = vmax.f32 %v109_v32, %v64_v10  ;;  %v226_v10 = vld [vmem:[#allocation3 + $0x50] sm:$0xff]  ;;  %v249_v34 = vld [vmem:[#allocation6 + $0x40] sm:$0xff] }
  0x2f   :  { %v87_v35 = vsub.f32 %v85_v27, %v86_v28  ;;  %v91_v39 = vsub.f32 %v89_v29, %v90_v30  ;;  %v123_v44 = vmax.f32 %v105_v22, 0.0  ;;  %v124_v45 = vmax.f32 %v107_v23, 0.0 }
  0x30   :  { %v119_v42 = vmax.f32 %v111_v33, %v66_v14  ;;  %v118_v43 = vmin.f32 %v113_v38, %v68_v15  ;;  %v456_v46 = vadd.f32 1e-06, %v57_v1  ;;  %v458_v47 = vadd.f32 1e-06, %v59_v3  ;;  %v228_v15 = vld [vmem:[#allocation6 + $0x28] sm:$0xff] }
  0x31   :  { %v71_v48 = vmul.f32 %v70_v31, %v69_v24  ;;  %v116_v49 = vsub.f32 %v114_v40, %v115_v41  ;;  %v88_v51 = vmax.f32 %v87_v35, 0.0  ;;  %v92_v52 = vmax.f32 %v91_v39, 0.0  ;;  %v240_v24 = vld [vmem:[#allocation3 + $0x60] sm:$0xff]  ;;  %v247_v33 = vld [vmem:[#allocation3 + $0x68] sm:$0xff] }
  0x32   :  { %v120_v50 = vsub.f32 %v118_v43, %v119_v42  ;;  %v96_v53 = vmul.f32 %v95_v37, %v94_v36  ;;  %311 = vrsqrt.f32 %v456_v46  ;;  %v125_v54 = vmul.f32 %v124_v45, %v123_v44 }
  0x33   :  { %313 = vrsqrt.f32 %v458_v47  ;;  %v117_v55 = vmax.f32 %v116_v49, 0.0  ;;  %v462_v57 = vmax.f32 %v76_v8, 1e-06  ;;  %v464_v58 = vmax.f32 %v78_v9, 1e-06 }
  0x34   :  { %v121_v56 = vmax.f32 %v120_v50, 0.0  ;;  %v466_v59 = vmul.f32 %v92_v52, %v88_v51  ;;  %v97_v60 = vadd.f32 %v96_v53, %v71_v48  ;;  %v153_v62 = vsub.f32 %v74_v7, %v442_v2  ;;  %v525_v51 = vld [vmem:[#allocation6 + $0x20] sm:$0xff] }
  0x35   :  { %315 = vrsqrt.f32 %v462_v57  ;;  %v126_v1 = vadd.f32 %v125_v54, %v71_v48  ;;  %v152_v4 = vmul.f32 %v151_v61, %v151_v61  ;;  %v475_v8 = vmax.f32 %v105_v22, 1e-06  ;;  %v150_v52 = vld [vmem:[#allocation3 + $0x20] sm:$0xff] }
  0x36   :  { %317 = vrsqrt.f32 %v464_v58  ;;  %v472_v63 = vmul.f32 %v121_v56, %v117_v55  ;;  %v98_v3 = vsub.f32 %v97_v60, %v466_v59  ;;  %v154_v6 = vmul.f32 %v153_v62, %v153_v62 }
  0x37   :  { %vm136_vm0 = vcmp.eq.f32.partialorder %v456_v46, inf  ;;  %vm138_vm1 = vcmp.eq.f32.partialorder %v456_v46, 0.0  ;;  %v479_v5 = vmax.f32 %v107_v23, 1e-06  ;;  %v139_v9 = vand.u32 2147483648, %v456_v46 }
  0x38   :  { %vm144_vm2 = vcmp.eq.f32.partialorder %v458_v47, inf  ;;  %vm146_vm3 = vcmp.eq.f32.partialorder %v458_v47, 0.0  ;;  %319 = vrsqrt.f32 %v475_v8  ;;  %v127_v12 = vsub.f32 %v126_v1, %v472_v63 }
  0x39   :  { %v147_v14 = vand.u32 2147483648, %v458_v47  ;;  %321 = vrsqrt.f32 %v479_v5  ;;  %v99_v19 = vadd.f32 1e-06, %v98_v3  ;;  %v490_v22 = vadd.f32 %v154_v6, %v152_v4 }
  0x3a   :  { %v189_v23 = vsub.f32 %v448_v16, %v440_v0  ;;  %vm159_vm4 = vcmp.eq.f32.partialorder %v462_v57, inf  ;;  %vm161_vm5 = vcmp.eq.f32.partialorder %v462_v57, 0.0  ;;  %v162_v26 = vand.u32 2147483648, %v462_v57 }
  0x3b   :  { %vm168_vm6 = vcmp.eq.f32.partialorder %v464_v58, inf  ;;  %v229_v29 = vsub.f32 %v226_v10, %v228_v15  ;;  %v236_v0 = vsub.f32 %v233_v17, %v235_v18  ;;  %v128_v30 = vadd.f32 1e-06, %v127_v12  ;;  %v261_v10 = vld [vmem:[#allocation3 + $0x78] sm:$0xff]  ;;  %v188_v18 = vld [vmem:[#allocation3 + $0x48] sm:$0xff] }
  0x3c   :  { %v312_v7 = vpop.eup %311  ;;  %vm170_vm7 = vcmp.eq.f32.partialorder %v464_v58, 0.0  ;;  %v171_v31 = vand.u32 2147483648, %v464_v58  ;;  %v243_v32 = vsub.f32 %v240_v24, %v242_v25  ;;  %v191_v37 = vsub.f32 %v450_v21, %v442_v2  ;;  %v254_v2 = vld [vmem:[#allocation3 + $0x70] sm:$0xff]  ;;  %v256_v21 = vld [vmem:[#allocation6 + $0x48] sm:$0xff] }
  0x3d   :  { %v314_v11 = vpop.eup %313  ;;  %v135_v13 = vmul.f32 %v312_v7, %v456_v46  ;;  %v230_v38 = vmul.f32 %v229_v29, %v229_v29  ;;  %v237_v39 = vmul.f32 %v236_v0, %v236_v0  ;;  %vm197_vm8 = vcmp.eq.f32.partialorder %v475_v8, inf }
  0x3e   :  { %v143_v20 = vmul.f32 %v314_v11, %v458_v47  ;;  %v244_v45 = vmul.f32 %v243_v32, %v243_v32  ;;  %v250_v48 = vsub.f32 %v247_v33, %v249_v34  ;;  %vm199_vm9 = vcmp.eq.f32.partialorder %v475_v8, 0.0  ;;  %v263_v11 = vld [vmem:[#allocation6 + $0x50] sm:$0xff] }
  0x3f   :  { %v137_v27 = vsel %vm136_vm0, %v456_v46, %v135_v13  ;;  %v316_v16 = vpop.eup %315  ;;  %v238_v44 = vadd.f32 %v237_v39, %v230_v38  ;;  %v200_v49 = vand.u32 2147483648, %v475_v8  ;;  %vm206_vm10 = vcmp.eq.f32.partialorder %v479_v5, inf }
  0x40   :  { %v145_v28 = vsel %vm144_vm2, %v458_v47, %v143_v20  ;;  %v318_v35 = vpop.eup %317  ;;  %v158_v36 = vmul.f32 %v316_v16, %v462_v57  ;;  %v140_v40 = vsel %vm138_vm1, %v139_v9, %v137_v27  ;;  %vm208_vm11 = vcmp.eq.f32.partialorder %v479_v5, 0.0 }
  0x41   :  { %v148_v41 = vsel %vm146_vm3, %v147_v14, %v145_v28  ;;  %v167_v42 = vmul.f32 %v318_v35, %v464_v58  ;;  %v209_v60 = vand.u32 2147483648, %v479_v5  ;;  %v257_v61 = vsub.f32 %v254_v2, %v256_v21 }
  0x42   :  { %v160_v43 = vsel %vm159_vm4, %v462_v57, %v158_v36  ;;  %v320_v50 = vpop.eup %319  ;;  %v245_v3 = vadd.f32 %v244_v45, %v238_v44  ;;  %v251_v4 = vmul.f32 %v250_v48, %v250_v48  ;;  %v130_v6 = vmul.f32 %v472_v63, %v99_v19 }
  0x43   :  { %v163_v46 = vsel %vm161_vm5, %v162_v26, %v160_v43  ;;  %v169_v47 = vsel %vm168_vm6, %v464_v58, %v167_v42  ;;  %v322_v55 = vpop.eup %321  ;;  %v196_v57 = vmul.f32 %v320_v50, %v475_v8  ;;  %v177_v7 = vsub.f32 %v150_v52, %v525_v51 }
  0x44   :  { %v164_v53 = vsub.f32 %v163_v46, %v140_v40  ;;  %v172_v54 = vsel %vm170_vm7, %v171_v31, %v169_v47  ;;  %v205_v1 = vmul.f32 %v322_v55, %v479_v5  ;;  %v190_v12 = vmul.f32 %v189_v23, %v189_v23 }
  0x45   :  { %v173_v56 = vsub.f32 %v172_v54, %v148_v41  ;;  %v198_v9 = vsel %vm197_vm8, %v475_v8, %v196_v57  ;;  %v192_v13 = vmul.f32 %v191_v37, %v191_v37  ;;  %v129_v63 = vmul.f32 %v128_v30, %v466_v59 }
  0x46   :  { %v174_v62 = vmul.f32 %v164_v53, %v164_v53  ;;  %v201_v14 = vsel %vm199_vm9, %v200_v49, %v198_v9  ;;  %v207_v15 = vsel %vm206_vm10, %v479_v5, %v205_v1  ;;  %v252_v25 = vadd.f32 %v251_v4, %v245_v3 }
  0x47   :  { %v175_v58 = vmul.f32 %v173_v56, %v173_v56  ;;  %v202_v19 = vsub.f32 %v201_v14, %v140_v40  ;;  %v210_v20 = vsel %vm208_vm11, %v209_v60, %v207_v15  ;;  %v258_v26 = vmul.f32 %v257_v61, %v257_v61 }
  0x48   :  { %v211_v24 = vsub.f32 %v210_v20, %v148_v41  ;;  %v264_v23 = vsub.f32 %v261_v10, %v263_v11  ;;  %v179_v27 = vmul.f32 %v150_v52, %v150_v52  ;;  %v178_v29 = vmul.f32 %v177_v7, %v177_v7 }
  0x49   :  { %v176_v17 = vadd.f32 %v175_v58, %v174_v62  ;;  %v212_v28 = vmul.f32 %v202_v19, %v202_v19  ;;  %v193_v0 = vadd.f32 %v192_v13, %v190_v12  ;;  %v215_v31 = vsub.f32 %v188_v18, %v525_v51 }
  0x4a   :  { %v213_v16 = vmul.f32 %v211_v24, %v211_v24  ;;  %vm62_vm12 = vcmp.gt.f32.partialorder %v525_v51, 0.0  ;;  %vm131_vm13 = vcmp.ge.f32.partialorder %v129_v63, %v130_v6  ;;  %v217_v5 = vmul.f32 %v188_v18, %v188_v18 }
  0x4b   :  { %v181_v8 = vadd.f32 %v176_v17, %v490_v22  ;;  %v259_v32 = vadd.f32 %v258_v26, %v252_v25  ;;  %v265_v33 = vmul.f32 %v264_v23, %v264_v23  ;;  %vm132_vm15 = vmxor %vm131_vm13, %vm399_vm14  ;;  %v184_v35 = vmul.f32 0.5, %v179_v27 }
  0x4c   :  { %v214_v30 = vadd.f32 %v213_v16, %v212_v28  ;;  %v216_v36 = vmul.f32 %v215_v31, %v215_v31  ;;  %vm180_vm0 = vmand %vm62_vm12, %vm131_vm13  ;;  %v222_v38 = vmul.f32 0.5, %v217_v5 }
  0x4d   :  { %v182_v59 = vmul.f32 5.0, %v181_v8  ;;  %v266_v39 = vadd.f32 %v265_v33, %v259_v32  ;;  %vm218_vm1 = vmand %vm62_vm12, %vm132_vm15 }
  0x4e   :  { %v219_v22 = vadd.f32 %v214_v30, %v193_v0 }
  0x4f   :  { %v183_v34 = vadd.f32 %v182_v59, %v178_v29  ;;  %v267_v43 = vsel %vm62_vm12, %v266_v39, 0.0 }
  0x50   :  { %v220_v37 = vmul.f32 5.0, %v219_v22 }
  0x51   :  { %v185_v40 = vsel %vm180_vm0, %v183_v34, %v184_v35 }
  0x52   :  { %v221_v41 = vadd.f32 %v220_v37, %v216_v36 }
  0x54   :  { %v223_v42 = vsel %vm218_vm1, %v221_v41, %v222_v38 }
  0x55   :  { %v224_v44 = vadd.f32 %v223_v42, %v185_v40 }
  0x57   :  { %v268_v45 = vadd.f32 %v267_v43, %v224_v44 }
  0x59   :  { %276 = vadd.xlane.f32.xlu0 %v268_v45 }
  0xe6   :  { %v277_v48 = vpop.xlane.xlu0 %276 }
  0xe7   :  { %v278_v2 = vrot.slane %v277_v48, 4 }
  0xe9   :  { %v279_v21 = vadd.f32 %v278_v2, %v277_v48 }
  0xeb   :  { %v280_v46 = vrot.slane %v279_v21, 2 }
  0xed   :  { %v281_v47 = vadd.f32 %v280_v46, %v279_v21 }
  0xef   :  { %v282_v49 = vrot.slane %v281_v47, 1 }
  0xf1   :  { %v283_v50 = vadd.f32 %v282_v49, %v281_v47 }
  0xf3   :  { %303 = vpush %v283_v50 }
 0x124   :  { %s304_s7 = spop %303 }
 0x125   :  { %v285_v52 = vstv %s304_s7 }
 0x126   :  { %286 = vst [vmem:[#allocation8] sm:$0xff] %v285_v52 }
 0x127   :  { %378 = shalt.err (!%p375_p6)
}
 0x128   :  { %s379_s11 = scalar_lea.hbm %s570_s2, 128 }
 0x129   :  { %p380_p7 = scmp.ne.s32.totalorder %s570_s2, %s379_s11  ;;  %p383_p8 = scmp.lt.u32.totalorder %s379_s11, %s570_s2 }
 0x12b   :  { %p385_p9 = pnand %p383_p8, %p380_p7 }
 0x12d   :  { %388 = shalt.err (!%p385_p9)
}
 0x12e   :  { %296 = dma.vmem_to_hbm [thread:$0]  %s294_s6, 128, %s570_s2, [#allocation5]  }
 0x12f   :  { %393 = dma.done.wait [#allocation5], 128  }
 0x130   :  { %394 = vsyncadd [#allocation5], 4294967168 }
 0x131   :  { %300 = vsyncpa [#allocation4], 1 }
 0x132   :  { %301 = vsyncpa [#allocation7], 1 }
 0x133   :  { %302 = vsyncpa [#allocation5], 1 }

</bundles_post_ra>
